<compile_context>
chip_gen: v7x
topology: tpu7x:2x2x1
jax: 0.10.0
libtpu: 0.0.40
codegen_flags: <defaults>
</compile_context>

<pallas_src>
import functools

import jax
import jax.numpy as jnp
from jax.experimental import pallas as pl
from jax.experimental.pallas import tpu as pltpu


def adapter_kernel(x_ref, dw_ref, db_ref, uw_ref, ub_ref, o_ref, *, scale):
    """One row-tile: down-proj -> ReLU -> up-proj -> scale -> +residual."""
    x = x_ref[...]                                                # (TILE_M, D)
    # down projection (MXU), accumulate in f32
    down = jnp.dot(x, dw_ref[...], preferred_element_type=jnp.float32)
    down = down + db_ref[...].astype(jnp.float32)                 # (TILE_M, bneck)
    # ReLU (VPU)
    down = jnp.maximum(down, 0.0)
    # dropout with p=0.0 is the identity (module default) -> skipped
    # cast back to input dtype so bf16 inputs keep the MXU on its native path
    down = down.astype(x_ref.dtype)
    # up projection (MXU), accumulate in f32
    up = jnp.dot(down, uw_ref[...], preferred_element_type=jnp.float32)
    up = up + ub_ref[...].astype(jnp.float32)                     # (TILE_M, D)
    # scale and residual add (residual defaults to x)
    o_ref[...] = (up * scale + x.astype(jnp.float32)).astype(o_ref.dtype)


def adapter_forward(x, down_w, down_b, up_w, up_b, *, scale=0.1, tile_m=512):
    """x: (B, N, D). down_w: (D, bottleneck). up_w: (bottleneck, D).

    tile_m: rows of the token slab processed per grid step.  512-1024 is a
    good range on v5e/v6e; re-derive for v7x (64 MiB VMEM) at large D.
    """
    B, N, D = x.shape
    bottleneck = down_w.shape[1]
    M = B * N

    # Clamp the tile for small inputs (block equal to the full dim is allowed).
    tile_m = min(tile_m, M)
    grid_m = pl.cdiv(M, tile_m)   # boundary block masked by Pallas; no assert

    x2 = x.reshape(M, D)
    db2 = down_b.reshape(1, bottleneck)
    ub2 = up_b.reshape(1, D)

    # Explicit VMEM budget: double-buffered x/out row tiles, double-buffered
    # (constant) weights & biases, plus f32 intermediates, plus headroom.
    itemsize = jnp.dtype(x.dtype).itemsize
    vmem_bytes = (
        2 * 2 * tile_m * D * itemsize            # x tile + out tile, 2 bufs each
        + 2 * 2 * D * bottleneck * itemsize      # down_w + up_w, 2 bufs each
        + 2 * 2 * (bottleneck + D) * itemsize    # biases
        + 2 * tile_m * max(D, bottleneck) * 4    # f32 intermediates
    )
    vmem_limit = min(int(vmem_bytes) + (8 << 20), 120 << 20)

    out2 = pl.pallas_call(
        functools.partial(adapter_kernel, scale=scale),
        out_shape=jax.ShapeDtypeStruct((M, D), x.dtype),
        grid=(grid_m,),
        in_specs=[
            pl.BlockSpec((tile_m, D), lambda i: (i, 0)),           # x row-tile
            pl.BlockSpec((D, bottleneck), lambda i: (0, 0)),       # down weight (resident)
            pl.BlockSpec((1, bottleneck), lambda i: (0, 0)),       # down bias
            pl.BlockSpec((bottleneck, D), lambda i: (0, 0)),       # up weight (resident)
            pl.BlockSpec((1, D), lambda i: (0, 0)),                # up bias
        ],
        out_specs=pl.BlockSpec((tile_m, D), lambda i: (i, 0)),
        compiler_params=pltpu.CompilerParams(
            dimension_semantics=("parallel",),
            vmem_limit_bytes=vmem_limit),
    )(x2, down_w, db2, up_w, ub2)

    return out2.reshape(B, N, D)


def adapter_reference(x, down_w, down_b, up_w, up_b, *, scale=0.1):
    down = jnp.maximum(x @ down_w + down_b, 0.0)
    up = down @ up_w + up_b
    return up * scale + x


if __name__ == "__main__":
    # Small shapes consistent with the module: tokens (B, N, d_model).
    # d_model=128 keeps the lane axis representative while staying small.
    B, N = 2, 64
    d_model, bottleneck = 128, 16
    scale = 0.1  # adapter_scalar='0.1'

    key = jax.random.PRNGKey(0)
    kx, kd, ku = jax.random.split(key, 3)

    x = jax.random.normal(kx, (B, N, d_model), dtype=jnp.float32)

    # Deterministic synthetic parameters.
    # down_proj: kaiming_uniform_(a=sqrt(5)) => U(-1/sqrt(fan_in), 1/sqrt(fan_in)).
    bound = 1.0 / (d_model ** 0.5)
    down_w = jax.random.uniform(kd, (d_model, bottleneck),
                                minval=-bound, maxval=bound, dtype=jnp.float32)
    down_b = jnp.zeros((bottleneck,), dtype=jnp.float32)
    # lora init zeros up_proj (output == x); use small non-zero deterministic
    # values instead so the up-projection path is actually exercised.
    up_w = 0.02 * jax.random.normal(ku, (bottleneck, d_model), dtype=jnp.float32)
    up_b = jnp.zeros((d_model,), dtype=jnp.float32)

    # f32 correctness check (tile_m clamps to M=128 here; non-divisible M is
    # handled by the cdiv grid + masked boundary block).
    out = adapter_forward(x, down_w, down_b, up_w, up_b, scale=scale, tile_m=512)
    out = jax.block_until_ready(out)
    ref = adapter_reference(x, down_w, down_b, up_w, up_b, scale=scale)
    assert out.shape == (B, N, d_model)
    assert jnp.allclose(out, ref, atol=1e-5, rtol=1e-5)

    # bf16 activations/weights path (f32 accumulation inside the kernel).
    xb = x.astype(jnp.bfloat16)
    out_bf16 = adapter_forward(xb, down_w.astype(jnp.bfloat16),
                               down_b.astype(jnp.bfloat16),
                               up_w.astype(jnp.bfloat16),
                               up_b.astype(jnp.bfloat16),
                               scale=scale, tile_m=512)
    out_bf16 = jax.block_until_ready(out_bf16)
    assert out_bf16.shape == (B, N, d_model)
    assert out_bf16.dtype == jnp.bfloat16
    assert float(jnp.max(jnp.abs(out_bf16.astype(jnp.float32) - ref))) < 0.1

    # TODO(synk): adapter_layernorm_option='in'/'out' (LayerNorm branch) and
    # learnable_scalar are not implemented; defaults ('none', fixed 0.1) are.
    print("KERNEL_OK")
</pallas_src>

<mosaic_0001>
module attributes {stable_mosaic.version = 11 : i64} {
  func.func @adapter_kernel(%arg0: i32, %arg1: memref<128x128xf32, #tpu.memory_space<vmem>>, %arg2: memref<128x16xf32, #tpu.memory_space<vmem>>, %arg3: memref<1x16xf32, #tpu.memory_space<vmem>>, %arg4: memref<16x128xf32, #tpu.memory_space<vmem>>, %arg5: memref<1x128xf32, #tpu.memory_space<vmem>>, %arg6: memref<128x128xf32, #tpu.memory_space<vmem>>) attributes {dimension_semantics = [#tpu.dimension_semantics<parallel>], iteration_bounds = array<i64: 1>, scalar_prefetch = 0 : i64, scratch_operands = 0 : i64, tpu.core_type = #tpu.core_type<tc>, window_params = [{transform_indices = @transform_0, window_bounds = array<i64: 128, 128>}, {pipeline_mode = #tpu.pipeline_mode<synchronous>, transform_indices = @transform_1, window_bounds = array<i64: 128, 16>}, {pipeline_mode = #tpu.pipeline_mode<synchronous>, transform_indices = @transform_2, window_bounds = array<i64: 1, 16>}, {pipeline_mode = #tpu.pipeline_mode<synchronous>, transform_indices = @transform_3, window_bounds = array<i64: 16, 128>}, {pipeline_mode = #tpu.pipeline_mode<synchronous>, transform_indices = @transform_4, window_bounds = array<i64: 1, 128>}, {transform_indices = @transform_5, window_bounds = array<i64: 128, 128>}]} {
    %c0 = arith.constant 0 : index
    %c0_0 = arith.constant 0 : index
    %0 = vector.load %arg1[%c0, %c0_0] : memref<128x128xf32, #tpu.memory_space<vmem>>, vector<128x128xf32>
    %c0_1 = arith.constant 0 : index
    %c0_2 = arith.constant 0 : index
    %1 = vector.load %arg2[%c0_1, %c0_2] : memref<128x16xf32, #tpu.memory_space<vmem>>, vector<128x16xf32>
    %cst = arith.constant dense<0.000000e+00> : vector<128x16xf32>
    %2 = tpu.matmul %0, %1, %cst {dimension_numbers = #tpu.dot_dimension_numbers<[1], [0], [0], [1], [0, 0, 1, 1], [], []>} : vector<128x128xf32>, vector<128x16xf32>, vector<128x16xf32> -> vector<128x16xf32>
    %c0_3 = arith.constant 0 : index
    %c0_4 = arith.constant 0 : index
    %3 = vector.load %arg3[%c0_3, %c0_4] : memref<1x16xf32, #tpu.memory_space<vmem>>, vector<1x16xf32>
    %4 = vector.broadcast %3 : vector<1x16xf32> to vector<128x16xf32>
    %5 = arith.addf %2, %4 : vector<128x16xf32>
    %cst_5 = arith.constant 0.000000e+00 : f32
    %6 = vector.broadcast %cst_5 : f32 to vector<128x16xf32>
    %7 = arith.maximumf %5, %6 : vector<128x16xf32>
    %c0_6 = arith.constant 0 : index
    %c0_7 = arith.constant 0 : index
    %8 = vector.load %arg4[%c0_6, %c0_7] : memref<16x128xf32, #tpu.memory_space<vmem>>, vector<16x128xf32>
    %cst_8 = arith.constant dense<0.000000e+00> : vector<128x128xf32>
    %9 = tpu.matmul %7, %8, %cst_8 {dimension_numbers = #tpu.dot_dimension_numbers<[1], [0], [0], [1], [0, 0, 1, 1], [], []>} : vector<128x16xf32>, vector<16x128xf32>, vector<128x128xf32> -> vector<128x128xf32>
    %c0_9 = arith.constant 0 : index
    %c0_10 = arith.constant 0 : index
    %10 = vector.load %arg5[%c0_9, %c0_10] : memref<1x128xf32, #tpu.memory_space<vmem>>, vector<1x128xf32>
    %11 = vector.broadcast %10 : vector<1x128xf32> to vector<128x128xf32>
    %12 = arith.addf %9, %11 : vector<128x128xf32>
    %cst_11 = arith.constant 1.000000e-01 : f32
    %13 = vector.broadcast %cst_11 : f32 to vector<128x128xf32>
    %14 = arith.mulf %12, %13 : vector<128x128xf32>
    %15 = arith.addf %14, %0 : vector<128x128xf32>
    %c0_12 = arith.constant 0 : index
    %c0_13 = arith.constant 0 : index
    %16 = vector.load %arg6[%c0_12, %c0_13] : memref<128x128xf32, #tpu.memory_space<vmem>>, vector<128x128xf32>
    tpu.vector_store %arg6[%c0_12, %c0_13], %15 {strides = array<i32>} : memref<128x128xf32, #tpu.memory_space<vmem>>, vector<128x128xf32>,
    return
  }
  func.func @transform_0(%arg0: i32) -> (i32, i32) {
    %c0_i32 = arith.constant 0 : i32
    %c0_i32_0 = arith.constant 0 : i32
    return %arg0, %c0_i32 : i32, i32
  }
  func.func @transform_1(%arg0: i32) -> (i32, i32) {
    %c0_i32 = arith.constant 0 : i32
    %c0_i32_0 = arith.constant 0 : i32
    %c0_i32_1 = arith.constant 0 : i32
    return %c0_i32, %c0_i32_0 : i32, i32
  }
  func.func @transform_2(%arg0: i32) -> (i32, i32) {
    %c0_i32 = arith.constant 0 : i32
    %c0_i32_0 = arith.constant 0 : i32
    %c0_i32_1 = arith.constant 0 : i32
    return %c0_i32, %c0_i32_0 : i32, i32
  }
  func.func @transform_3(%arg0: i32) -> (i32, i32) {
    %c0_i32 = arith.constant 0 : i32
    %c0_i32_0 = arith.constant 0 : i32
    %c0_i32_1 = arith.constant 0 : i32
    return %c0_i32, %c0_i32_0 : i32, i32
  }
  func.func @transform_4(%arg0: i32) -> (i32, i32) {
    %c0_i32 = arith.constant 0 : i32
    %c0_i32_0 = arith.constant 0 : i32
    %c0_i32_1 = arith.constant 0 : i32
    return %c0_i32, %c0_i32_0 : i32, i32
  }
  func.func @transform_5(%arg0: i32) -> (i32, i32) {
    %c0_i32 = arith.constant 0 : i32
    %c0_i32_0 = arith.constant 0 : i32
    return %arg0, %c0_i32 : i32, i32
  }
}

</mosaic_0001>

<bundles_post_ra>
// kernel: tpu_custom_call.1
= control target key start
LH: loop header
LB: loop body
LE: loop exit
PB: predicated region body
PF: predicated region fallthrough
CT: control target
= control target key end

     0   :  { %s954_s0 = inlined_call_operand.vmem [shape: f32[128,128], index: 0, kind: input, shape index: {}]   ;;  %s955_s1 = inlined_call_operand.vmem [shape: f32[128,16], index: 1, kind: input, shape index: {}]   ;;  %s956_s2 = inlined_call_operand.vmem [shape: f32[1,16], index: 2, kind: input, shape index: {}]   ;;  %s957_s3 = inlined_call_operand.vmem [shape: f32[16,128], index: 3, kind: input, shape index: {}]   ;;  %s958_s4 = inlined_call_operand.vmem [shape: f32[1,128], index: 4, kind: input, shape index: {}]   ;;  %s959_s5 = inlined_call_operand.hbm [shape: f32[128,128], index: 5, kind: output, shape index: {}]  }
   0x1   :  { %v37_v0 = vld [vmem:[%s955_s1] sm:$0xff]  ;;  %v38_v1 = vld [vmem:[%s955_s1 + $0x8] sm:$0xff]  ;;  %v39_v2 = vld [vmem:[%s955_s1 + $0x10] sm:$0xff] }
   0x2   :  { %v640_v3 = vpack.c.bf16 %v38_v1, %v37_v0  ;;  %v40_v4 = vld [vmem:[%s955_s1 + $0x18] sm:$0xff]  ;;  %v41_v6 = vld [vmem:[%s955_s1 + $0x20] sm:$0xff]  ;;  %v42_v7 = vld [vmem:[%s955_s1 + $0x28] sm:$0xff] }
   0x3   :  { %v644_v5 = vpack.c.bf16 %v40_v4, %v39_v2  ;;  %v648_v8 = vpack.c.bf16 %v42_v7, %v41_v6  ;;  %v757_v9 = vld [vmem:[%s954_s0] sm:$0xff]  ;;  %v43_v10 = vld [vmem:[%s955_s1 + $0x30] sm:$0xff]  ;;  %v44_v11 = vld [vmem:[%s955_s1 + $0x38] sm:$0xff] }
   0x4   :  { %641 = vmatprep.subr.bf16.mxu0 %v640_v3  ;;  %588 = vmatprep.mubr.f32.mxu0 %v757_v9  ;;  %v652_v12 = vpack.c.bf16 %v44_v11, %v43_v10  ;;  %v45_v13 = vld [vmem:[%s955_s1 + $0x40] sm:$0xff]  ;;  %v46_v14 = vld [vmem:[%s955_s1 + $0x48] sm:$0xff] }
   0x5   :  { %643 = vmatpush3.bf16.msra.mxu0 %v640_v3 }
   0x6   :  { %645 = vmatprep.subr.bf16.mxu0 %v644_v5 }
   0x9   :  { %647 = vmatpush3.bf16.msra.mxu0 %v644_v5 }
   0xa   :  { %649 = vmatprep.subr.bf16.mxu0 %v648_v8 }
   0xb   :  { %10 = vsyncpa [#allocation3], 0  ;;  %v656_v15 = vpack.c.bf16 %v46_v14, %v45_v13  ;;  %v47_v16 = vld [vmem:[%s955_s1 + $0x50] sm:$0xff]  ;;  %v48_v17 = vld [vmem:[%s955_s1 + $0x58] sm:$0xff]  ;;  %vm230_vm0 = vcmask 130048  }
   0xc   :  { %v660_v18 = vpack.c.bf16 %v48_v17, %v47_v16  ;;  %v49_v19 = vld [vmem:[%s955_s1 + $0x60] sm:$0xff]  ;;  %v50_v20 = vld [vmem:[%s955_s1 + $0x68] sm:$0xff]  ;;  %v51_v22 = vld [vmem:[%s955_s1 + $0x70] sm:$0xff] }
   0xd   :  { %651 = vmatpush3.bf16.msra.mxu0 %v648_v8  ;;  %v664_v21 = vpack.c.bf16 %v50_v20, %v49_v19  ;;  %v52_v23 = vld [vmem:[%s955_s1 + $0x78] sm:$0xff]  ;;  %v793_v25 = vld [vmem:[%s954_s0 + $0x8] sm:$0xff]  ;;  %v798_v26 = vld [vmem:[%s954_s0 + $0x10] sm:$0xff] }
   0xe   :  { %653 = vmatprep.subr.bf16.mxu0 %v652_v12  ;;  %v668_v24 = vpack.c.bf16 %v52_v23, %v51_v22  ;;  %v805_v27 = vld [vmem:[%s954_s0 + $0x18] sm:$0xff]  ;;  %v810_v28 = vld [vmem:[%s954_s0 + $0x20] sm:$0xff]  ;;  %v817_v29 = vld [vmem:[%s954_s0 + $0x28] sm:$0xff] }
   0xf   :  { %v822_v30 = vld [vmem:[%s954_s0 + $0x30] sm:$0xff]  ;;  %v829_v31 = vld [vmem:[%s954_s0 + $0x38] sm:$0xff]  ;;  %v834_v32 = vld [vmem:[%s954_s0 + $0x40] sm:$0xff] }
  0x10   :  { %v841_v33 = vld [vmem:[%s954_s0 + $0x48] sm:$0xff]  ;;  %v846_v34 = vld [vmem:[%s954_s0 + $0x50] sm:$0xff]  ;;  %v853_v35 = vld [vmem:[%s954_s0 + $0x58] sm:$0xff] }
  0x11   :  { %655 = vmatpush3.bf16.msra.mxu0 %v652_v12  ;;  %v858_v36 = vld [vmem:[%s954_s0 + $0x60] sm:$0xff]  ;;  %v865_v37 = vld [vmem:[%s954_s0 + $0x68] sm:$0xff]  ;;  %v870_v38 = vld [vmem:[%s954_s0 + $0x70] sm:$0xff] }
  0x12   :  { %657 = vmatprep.subr.bf16.mxu0 %v656_v15  ;;  %v877_v39 = vld [vmem:[%s954_s0 + $0x78] sm:$0xff]  ;;  %v221_v40 = vld [vmem:[%s957_s3] sm:$0xff]  ;;  %v222_v41 = vld [vmem:[%s957_s3 + $0x8] sm:$0xff]  ;;  %s703_s3 = smov [#allocation2]  }
  0x13   :  { %v672_v42 = vpack.c.bf16 %v222_v41, %v221_v40  ;;  %v488_v43 = vld [vmem:[%s956_s2] ss:$0 sm:$0xff] }
  0x15   :  { %659 = vmatpush3.bf16.msra.mxu0 %v656_v15  ;;  %673 = vmatprep.subr.bf16.mxu1 %v672_v42 }
  0x16   :  { %661 = vmatprep.subr.bf16.mxu0 %v660_v18  ;;  %675 = vmatpush3.bf16.msra.mxu1 %v672_v42 }
  0x19   :  { %663 = vmatpush3.bf16.msra.mxu0 %v660_v18 }
  0x1a   :  { %665 = vmatprep.subr.bf16.mxu0 %v664_v21 }
  0x1d   :  { %667 = vmatpush3.bf16.msra.mxu0 %v664_v21 }
  0x1e   :  { %669 = vmatprep.subr.bf16.mxu0 %v668_v24 }
  0x21   :  { %671 = vmatpush3.bf16.msra.mxu0 %v668_v24 }
  0x24   :  { %589 = vmatmul.mubr.f32.vlgmr.msra.gmra.mrb[0].mxu0 %v793_v25 }
  0x25   :  { %591 = vmatprep.mubr.f32.mxu0 %v798_v26 }
  0x28   :  { %592 = vmatmul.mubr.f32.gmra.mrb[2].mxu0 %v805_v27 }
  0x29   :  { %594 = vmatprep.mubr.f32.mxu0 %v810_v28 }
  0x2c   :  { %595 = vmatmul.mubr.f32.gmra.mrb[4].mxu0 %v817_v29 }
  0x2d   :  { %597 = vmatprep.mubr.f32.mxu0 %v822_v30 }
  0x30   :  { %598 = vmatmul.mubr.f32.gmra.mrb[6].mxu0 %v829_v31 }
  0x31   :  { %600 = vmatprep.mubr.f32.mxu0 %v834_v32 }
  0x34   :  { %601 = vmatmul.mubr.f32.gmra.mrb[8].mxu0 %v841_v33 }
  0x35   :  { %603 = vmatprep.mubr.f32.mxu0 %v846_v34 }
  0x38   :  { %604 = vmatmul.mubr.f32.gmra.mrb[10].mxu0 %v853_v35 }
  0x39   :  { %606 = vmatprep.mubr.f32.mxu0 %v858_v36 }
  0x3c   :  { %607 = vmatmul.mubr.f32.gmra.mrb[12].mxu0 %v865_v37 }
  0x3d   :  { %609 = vmatprep.mubr.f32.mxu0 %v870_v38 }
  0x40   :  { %610 = vmatmul.mubr.f32.gmra.mrb[14].mxu0 %v877_v39 }
  0xf7   :  { %v590_v44 = vpop.f32.mrb[0].mxu0 }
  0xf8   :  { %v132_v45 = vadd.f32 %v590_v44, %v488_v43  ;;  %v126_v46 = vpop.f32.mrb[1].mxu0 }
  0xf9   :  { %v127_v47 = vadd.f32 %v488_v43, %v126_v46 }
  0xfa   :  { %v206_v50 = vmax.f32 %v132_v45, 0.0  ;;  %v908_v45 = vld [vmem:[%s958_s4] ss:$0 sm:$0xff]  ;;  %s477_s4 = sshll.u32 %s703_s3, 4  ;;  %s478_s4 = int_to_ptr.vmem [resolvable:$true] %s477_s4 }
  0xfb   :  { %v205_v48 = vmax.f32 %v127_v47, 0.0  ;;  %v593_v49 = vpop.f32.mrb[2].mxu0  ;;  %s679_s11 = scalar_lea.vmem %s478_s4, 2048  ;;  %p684_p1 = scmp.lt.s32.totalorder %s478_s4, %s478_s4 }
  0xfc   :  { %v142_v51 = vadd.f32 %v593_v49, %v488_v43  ;;  %v136_v52 = vpop.f32.mrb[3].mxu0  ;;  %p680_p0 = scmp.ne.s32.totalorder %s478_s4, %s679_s11  ;;  %p685_p2 = scmp.lt.s32.totalorder %s679_s11, %s679_s11 }
  0xfd   :  { %v137_v53 = vadd.f32 %v488_v43, %v136_v52  ;;  %616 = vmatprep.mubr.msk.f32.mxu1 %vm230_vm0, %v205_v48 }
  0xfe   :  { %617 = vmatmul.mubr.msk.f32.vlgmr.msra.gmra.mrb[0].mxu1 %vm230_vm0, %v206_v50  ;;  %v208_v56 = vmax.f32 %v142_v51, 0.0  ;;  %p686_p3 = por %p685_p2, %p684_p1 }
  0xff   :  { %v207_v54 = vmax.f32 %v137_v53, 0.0  ;;  %v596_v55 = vpop.f32.mrb[4].mxu0 }
 0x100   :  { %v152_v57 = vadd.f32 %v596_v55, %v488_v43  ;;  %v146_v58 = vpop.f32.mrb[5].mxu0  ;;  %p687_p4 = pnand %p686_p3, %p680_p0 }
 0x101   :  { %v147_v59 = vadd.f32 %v488_v43, %v146_v58  ;;  %619 = vmatprep.mubr.msk.f32.mxu1 %vm230_vm0, %v207_v54 }
 0x102   :  { %620 = vmatmul.mubr.msk.f32.gmra.mrb[2].mxu1 %vm230_vm0, %v208_v56  ;;  %v210_v62 = vmax.f32 %v152_v57, 0.0 }
 0x103   :  { %v209_v60 = vmax.f32 %v147_v59, 0.0  ;;  %v599_v61 = vpop.f32.mrb[6].mxu0 }
 0x104   :  { %v162_v63 = vadd.f32 %v599_v61, %v488_v43  ;;  %v156_v0 = vpop.f32.mrb[7].mxu0 }
 0x105   :  { %v157_v1 = vadd.f32 %v488_v43, %v156_v0  ;;  %622 = vmatprep.mubr.msk.f32.mxu1 %vm230_vm0, %v209_v60 }
 0x106   :  { %623 = vmatmul.mubr.msk.f32.gmra.mrb[4].mxu1 %vm230_vm0, %v210_v62  ;;  %v212_v4 = vmax.f32 %v162_v63, 0.0 }
 0x107   :  { %v211_v2 = vmax.f32 %v157_v1, 0.0  ;;  %v602_v3 = vpop.f32.mrb[8].mxu0 }
 0x108   :  { %v172_v5 = vadd.f32 %v602_v3, %v488_v43  ;;  %v166_v6 = vpop.f32.mrb[9].mxu0 }
 0x109   :  { %v167_v7 = vadd.f32 %v488_v43, %v166_v6  ;;  %625 = vmatprep.mubr.msk.f32.mxu1 %vm230_vm0, %v211_v2 }
 0x10a   :  { %626 = vmatmul.mubr.msk.f32.gmra.mrb[6].mxu1 %vm230_vm0, %v212_v4  ;;  %v214_v11 = vmax.f32 %v172_v5, 0.0 }
 0x10b   :  { %v213_v8 = vmax.f32 %v167_v7, 0.0  ;;  %v605_v10 = vpop.f32.mrb[10].mxu0 }
 0x10c   :  { %v182_v12 = vadd.f32 %v605_v10, %v488_v43  ;;  %v176_v13 = vpop.f32.mrb[11].mxu0 }
 0x10d   :  { %v177_v14 = vadd.f32 %v488_v43, %v176_v13  ;;  %628 = vmatprep.mubr.msk.f32.mxu1 %vm230_vm0, %v213_v8 }
 0x10e   :  { %629 = vmatmul.mubr.msk.f32.gmra.mrb[8].mxu1 %vm230_vm0, %v214_v11  ;;  %v216_v17 = vmax.f32 %v182_v12, 0.0 }
 0x10f   :  { %v215_v15 = vmax.f32 %v177_v14, 0.0  ;;  %v608_v16 = vpop.f32.mrb[12].mxu0 }
 0x110   :  { %v192_v18 = vadd.f32 %v608_v16, %v488_v43  ;;  %v186_v19 = vpop.f32.mrb[13].mxu0 }
 0x111   :  { %v187_v20 = vadd.f32 %v488_v43, %v186_v19  ;;  %631 = vmatprep.mubr.msk.f32.mxu1 %vm230_vm0, %v215_v15 }
 0x112   :  { %632 = vmatmul.mubr.msk.f32.gmra.mrb[10].mxu1 %vm230_vm0, %v216_v17  ;;  %v218_v23 = vmax.f32 %v192_v18, 0.0 }
 0x113   :  { %v217_v21 = vmax.f32 %v187_v20, 0.0  ;;  %v611_v22 = vpop.f32.mrb[14].mxu0 }
 0x114   :  { %v202_v24 = vadd.f32 %v611_v22, %v488_v43  ;;  %v196_v40 = vpop.f32.mrb[15].mxu0 }
 0x115   :  { %v197_v41 = vadd.f32 %v488_v43, %v196_v40  ;;  %634 = vmatprep.mubr.msk.f32.mxu1 %vm230_vm0, %v217_v21 }
 0x116   :  { %635 = vmatmul.mubr.msk.f32.gmra.mrb[12].mxu1 %vm230_vm0, %v218_v23  ;;  %v220_v44 = vmax.f32 %v202_v24, 0.0 }
 0x117   :  { %v219_v42 = vmax.f32 %v197_v41, 0.0 }
 0x119   :  { %637 = vmatprep.mubr.msk.f32.mxu1 %vm230_vm0, %v219_v42 }
 0x11a   :  { %638 = vmatmul.mubr.msk.f32.gmra.mrb[14].mxu1 %vm230_vm0, %v220_v44 }
 0x1d1   :  { %v618_v46 = vpop.f32.mrb[0].mxu1 }
 0x1d2   :  { %v351_v47 = vadd.f32 %v618_v46, %v908_v45  ;;  %v345_v48 = vpop.f32.mrb[1].mxu1 }
 0x1d3   :  { %v346_v43 = vadd.f32 %v908_v45, %v345_v48 }
 0x1d4   :  { %v425_v49 = vmul.f32 0.1, %v351_v47 }
 0x1d5   :  { %v424_v50 = vmul.f32 0.1, %v346_v43  ;;  %v621_v51 = vpop.f32.mrb[2].mxu1 }
 0x1d6   :  { %v441_v52 = vadd.f32 %v425_v49, %v793_v25  ;;  %v361_v53 = vadd.f32 %v621_v51, %v908_v45  ;;  %v355_v54 = vpop.f32.mrb[3].mxu1 }
 0x1d7   :  { %v440_v55 = vadd.f32 %v424_v50, %v757_v9  ;;  %v356_v56 = vadd.f32 %v908_v45, %v355_v54 }
 0x1d8   :  { %457 = vst [vmem:[#allocation2 + $0x8] sm:$0xff] %v441_v52  ;;  %v427_v57 = vmul.f32 0.1, %v361_v53 }
 0x1d9   :  { %456 = vst [vmem:[#allocation2] sm:$0xff] %v440_v55  ;;  %v426_v58 = vmul.f32 0.1, %v356_v56  ;;  %v624_v59 = vpop.f32.mrb[4].mxu1 }
 0x1da   :  { %v443_v60 = vadd.f32 %v427_v57, %v805_v27  ;;  %v371_v61 = vadd.f32 %v624_v59, %v908_v45  ;;  %v365_v62 = vpop.f32.mrb[5].mxu1 }
 0x1db   :  { %v442_v63 = vadd.f32 %v426_v58, %v798_v26  ;;  %v366_v25 = vadd.f32 %v908_v45, %v365_v62 }
 0x1dc   :  { %459 = vst [vmem:[#allocation2 + $0x18] sm:$0xff] %v443_v60  ;;  %v429_v0 = vmul.f32 0.1, %v371_v61 }
 0x1dd   :  { %458 = vst [vmem:[#allocation2 + $0x10] sm:$0xff] %v442_v63  ;;  %v428_v9 = vmul.f32 0.1, %v366_v25  ;;  %v627_v1 = vpop.f32.mrb[6].mxu1 }
 0x1de   :  { %v445_v2 = vadd.f32 %v429_v0, %v817_v29  ;;  %v381_v3 = vadd.f32 %v627_v1, %v908_v45  ;;  %v375_v4 = vpop.f32.mrb[7].mxu1 }
 0x1df   :  { %v444_v5 = vadd.f32 %v428_v9, %v810_v28  ;;  %v376_v27 = vadd.f32 %v908_v45, %v375_v4 }
 0x1e0   :  { %461 = vst [vmem:[#allocation2 + $0x28] sm:$0xff] %v445_v2  ;;  %v431_v6 = vmul.f32 0.1, %v381_v3 }
 0x1e1   :  { %460 = vst [vmem:[#allocation2 + $0x20] sm:$0xff] %v444_v5  ;;  %v430_v26 = vmul.f32 0.1, %v376_v27  ;;  %v630_v7 = vpop.f32.mrb[8].mxu1 }
 0x1e2   :  { %v447_v8 = vadd.f32 %v431_v6, %v829_v31  ;;  %v391_v10 = vadd.f32 %v630_v7, %v908_v45  ;;  %v385_v11 = vpop.f32.mrb[9].mxu1 }
 0x1e3   :  { %v446_v12 = vadd.f32 %v430_v26, %v822_v30  ;;  %v386_v29 = vadd.f32 %v908_v45, %v385_v11 }
 0x1e4   :  { %463 = vst [vmem:[#allocation2 + $0x38] sm:$0xff] %v447_v8  ;;  %v433_v13 = vmul.f32 0.1, %v391_v10 }
 0x1e5   :  { %462 = vst [vmem:[#allocation2 + $0x30] sm:$0xff] %v446_v12  ;;  %v432_v28 = vmul.f32 0.1, %v386_v29  ;;  %v633_v14 = vpop.f32.mrb[10].mxu1 }
 0x1e6   :  { %v449_v15 = vadd.f32 %v433_v13, %v841_v33  ;;  %v401_v16 = vadd.f32 %v633_v14, %v908_v45  ;;  %v395_v17 = vpop.f32.mrb[11].mxu1 }
 0x1e7   :  { %v448_v18 = vadd.f32 %v432_v28, %v834_v32  ;;  %v396_v31 = vadd.f32 %v908_v45, %v395_v17 }
 0x1e8   :  { %465 = vst [vmem:[#allocation2 + $0x48] sm:$0xff] %v449_v15  ;;  %v435_v19 = vmul.f32 0.1, %v401_v16 }
 0x1e9   :  { %464 = vst [vmem:[#allocation2 + $0x40] sm:$0xff] %v448_v18  ;;  %v434_v30 = vmul.f32 0.1, %v396_v31  ;;  %v636_v20 = vpop.f32.mrb[12].mxu1 }
 0x1ea   :  { %v451_v21 = vadd.f32 %v435_v19, %v853_v35  ;;  %v411_v22 = vadd.f32 %v636_v20, %v908_v45  ;;  %v405_v23 = vpop.f32.mrb[13].mxu1 }
 0x1eb   :  { %v450_v24 = vadd.f32 %v434_v30, %v846_v34  ;;  %v406_v33 = vadd.f32 %v908_v45, %v405_v23 }
 0x1ec   :  { %467 = vst [vmem:[#allocation2 + $0x58] sm:$0xff] %v451_v21  ;;  %v437_v40 = vmul.f32 0.1, %v411_v22 }
 0x1ed   :  { %466 = vst [vmem:[#allocation2 + $0x50] sm:$0xff] %v450_v24  ;;  %v436_v32 = vmul.f32 0.1, %v406_v33  ;;  %v639_v41 = vpop.f32.mrb[14].mxu1 }
 0x1ee   :  { %v453_v42 = vadd.f32 %v437_v40, %v865_v37  ;;  %v421_v44 = vadd.f32 %v639_v41, %v908_v45  ;;  %v415_v46 = vpop.f32.mrb[15].mxu1 }
 0x1ef   :  { %v452_v47 = vadd.f32 %v436_v32, %v858_v36  ;;  %v416_v35 = vadd.f32 %v908_v45, %v415_v46 }
 0x1f0   :  { %469 = vst [vmem:[#allocation2 + $0x68] sm:$0xff] %v453_v42  ;;  %v439_v34 = vmul.f32 0.1, %v421_v44 }
 0x1f1   :  { %468 = vst [vmem:[#allocation2 + $0x60] sm:$0xff] %v452_v47  ;;  %v438_v48 = vmul.f32 0.1, %v416_v35 }
 0x1f2   :  { %v455_v43 = vadd.f32 %v439_v34, %v877_v39 }
 0x1f3   :  { %v454_v49 = vadd.f32 %v438_v48, %v870_v38 }
 0x1f4   :  { %471 = vst [vmem:[#allocation2 + $0x78] sm:$0xff] %v455_v43 }
 0x1f5   :  { %470 = vst [vmem:[#allocation2 + $0x70] sm:$0xff] %v454_v49 }
 0x1f6   :  { %690 = shalt.err (!%p687_p4)
}
 0x1f7   :  { %s691_s14 = scalar_lea.hbm %s959_s5, 2048 }
 0x1f8   :  { %p692_p5 = scmp.ne.s32.totalorder %s959_s5, %s691_s14  ;;  %p695_p6 = scmp.lt.u32.totalorder %s691_s14, %s959_s5 }
 0x1fa   :  { %p697_p7 = pnand %p695_p6, %p692_p5 }
 0x1fc   :  { %700 = shalt.err (!%p697_p7)
}
 0x1fd   :  { %s704_s19 = smov 128   ;;  %s705_s20 = smov 8  }
 0x1fe   :  { %483 = dma.vmem_to_hbm [thread:$0]  %s478_s4, 2048, %s959_s5, [#allocation3], %s704_s19, %s704_s19, %s705_s20  }
 0x1ff   :  { %701 = dma.done.wait [#allocation3], 2048  }
 0x200   :  { %702 = vsyncadd [#allocation3], 4294965248 }
 0x201   :  { %487 = vsyncpa [#allocation3], 1 }

</bundles_post_ra>
